<compile_context>
chip_gen: v7x
topology: tpu7x:2x2x1
jax: 0.10.0
libtpu: 0.0.40
codegen_flags: <defaults>
</compile_context>

<pallas_src>
import jax
import jax.numpy as jnp
from jax.experimental import pallas as pl
from jax.experimental.pallas import tpu as pltpu

_LANES = 128
_SUBLANES = 8


def _loss_kernel(scale_ref, y_ref, pe_ref, inv_na_ref, fgt_ref, fpd_ref,
                 out_ref, acc_ref):
    step = pl.program_id(0)

    @pl.when(step == 0)
    def _():
        acc_ref[0] = jnp.float32(0.0)

    # Force partial sum for this lane-dense tile (cast to f32 after the load;
    # padded tail lanes are identical zeros in both operands -> no bias).
    f_diff = fgt_ref[...].astype(jnp.float32) - fpd_ref[...].astype(jnp.float32)
    acc_ref[0] += jnp.sum(f_diff * f_diff)

    @pl.when(step == pl.num_programs(0) - 1)
    def _():
        # Energy term (tiny: one lane-padded row per quantity). Padded lanes
        # have inv_na == 0 so they contribute nothing.
        e_diff = (y_ref[...] - pe_ref[...]) * inv_na_ref[...]
        sum_e = jnp.sum(e_diff * e_diff)
        # scale_ref = [energy_weight / G, forces_weight / (3N)]
        out_ref[0] = scale_ref[0] * sum_e + scale_ref[1] * acc_ref[0]


def _ceil_to(x, m):
    return -(-x // m) * m


def weighted_energy_forces_loss(ptr, y, force_gt, pred_energy, pred_force,
                                energy_weight=1.0, forces_weight=1.0,
                                max_tile_rows=1024):
    """JAX wrapper.

    ptr: (G+1,) int32; y, pred_energy: (G,); force_gt, pred_force: (N, 3)
    (forces may be any float dtype, e.g. bf16 -- the f32 cast happens in-kernel).
    """
    G = int(y.shape[0])
    N = int(force_gt.shape[0])
    n_force = N * int(force_gt.shape[1])            # 3N, true mean divisor

    # Glue (G-element ops, done once in the wrapper): atom counts and an
    # exact reciprocal so the kernel multiplies instead of dividing.
    num_atoms = (ptr[1:] - ptr[:-1]).astype(jnp.float32)
    inv_na = 1.0 / num_atoms

    # Lane-padded per-graph row vectors (padding -> zero contribution).
    Gp = _ceil_to(max(G, 1), _LANES)

    def pad_row(v):
        return jnp.pad(v.astype(jnp.float32), (0, Gp - G)).reshape(1, Gp)

    y2 = pad_row(y)
    pe2 = pad_row(pred_energy)
    inv2 = pad_row(inv_na)

    # Lane-dense force slabs: flatten (N,3) -> (rows_total, 128), identical
    # zero padding on both arrays, native dtype preserved.
    # TODO(synk): the wrapper-side pad is one extra HBM copy of the force
    # arrays; an in-kernel ragged-tail mask would avoid it but needs 1-D edge
    # blocks, kept out for robustness.
    max_tile_rows = max(_SUBLANES, (max_tile_rows // _SUBLANES) * _SUBLANES)
    rows = max(_SUBLANES, _ceil_to(-(-n_force // _LANES), _SUBLANES))
    tile_rows = min(max_tile_rows, rows)
    rows_total = _ceil_to(rows, tile_rows)
    steps = rows_total // tile_rows

    def to_slab(f):
        flat = f.reshape(-1)                        # no dtype upcast here
        flat = jnp.pad(flat, (0, rows_total * _LANES - flat.shape[0]))
        return flat.reshape(rows_total, _LANES)

    fgt_slab = to_slab(force_gt)
    fpd_slab = to_slab(pred_force)

    # Folded constants as a single SMEM operand: [ew/G, fw/(3N)].
    scales = jnp.asarray([energy_weight / G, forces_weight / n_force],
                         dtype=jnp.float32)

    # TODO(synk): on v7x a leading size-2 "parallel" axis could split the
    # force reduction across both TensorCores (2 partial sums); single-core
    # "arbitrary" reduction kept here for simplicity/portability.
    out = pl.pallas_call(
        _loss_kernel,
        out_shape=jax.ShapeDtypeStruct((1,), jnp.float32),
        grid_spec=pltpu.PrefetchScalarGridSpec(
            num_scalar_prefetch=0,
            grid=(steps,),
            in_specs=[
                pl.BlockSpec(memory_space=pltpu.SMEM),                 # scales (2,)
                pl.BlockSpec((1, Gp), lambda i: (0, 0)),               # y
                pl.BlockSpec((1, Gp), lambda i: (0, 0)),               # pred energy
                pl.BlockSpec((1, Gp), lambda i: (0, 0)),               # 1 / num_atoms
                pl.BlockSpec((tile_rows, _LANES), lambda i: (i, 0)),   # force gt slab
                pl.BlockSpec((tile_rows, _LANES), lambda i: (i, 0)),   # force pred slab
            ],
            out_specs=pl.BlockSpec(memory_space=pltpu.SMEM),
            scratch_shapes=[pltpu.SMEM((1,), jnp.float32)],            # running sum
        ),
        compiler_params=pltpu.CompilerParams(
            dimension_semantics=("arbitrary",)),
    )(scales, y2, pe2, inv2, fgt_slab, fpd_slab)
    return out[0]


def _reference(ptr, y, force_gt, pred_energy, pred_force, ew=1.0, fw=1.0):
    num_atoms = (ptr[1:] - ptr[:-1]).astype(jnp.float32)
    loss_e = jnp.mean(jnp.square((y - pred_energy) / num_atoms))
    loss_f = jnp.mean(jnp.square(force_gt.astype(jnp.float32)
                                 - pred_force.astype(jnp.float32)))
    return ew * loss_e + fw * loss_f


if __name__ == "__main__":
    key = jax.random.PRNGKey(0)
    k1, k2, k3, k4 = jax.random.split(key, 4)

    # Case 1: tiny batch -- 2 graphs with 3 and 5 atoms (8 atoms total), f32.
    ptr = jnp.asarray([0, 3, 8], dtype=jnp.int32)
    y = jax.random.normal(k1, (2,), dtype=jnp.float32)
    force_gt = jax.random.normal(k2, (8, 3), dtype=jnp.float32)
    pred_energy = jax.random.normal(k3, (2,), dtype=jnp.float32)
    pred_force = jax.random.normal(k4, (8, 3), dtype=jnp.float32)

    out = weighted_energy_forces_loss(ptr, y, force_gt, pred_energy, pred_force,
                                      1.0, 1.0)
    out = jax.block_until_ready(out)
    ref = _reference(ptr, y, force_gt, pred_energy, pred_force, 1.0, 1.0)
    assert jnp.allclose(out, ref, rtol=1e-5, atol=1e-6), (out, ref)

    # Case 2: multi-step grid + native bf16 forces -- 4 graphs, 600 atoms.
    k5, k6, k7, k8 = jax.random.split(jax.random.PRNGKey(1), 4)
    ptr2 = jnp.asarray([0, 100, 250, 420, 600], dtype=jnp.int32)
    y_b = jax.random.normal(k5, (4,), dtype=jnp.float32)
    fgt_b = jax.random.normal(k6, (600, 3), dtype=jnp.bfloat16)
    pe_b = jax.random.normal(k7, (4,), dtype=jnp.float32)
    fpd_b = jax.random.normal(k8, (600, 3), dtype=jnp.bfloat16)

    out2 = weighted_energy_forces_loss(ptr2, y_b, fgt_b, pe_b, fpd_b,
                                       1.0, 0.5, max_tile_rows=8)
    out2 = jax.block_until_ready(out2)
    ref2 = _reference(ptr2, y_b, fgt_b, pe_b, fpd_b, 1.0, 0.5)
    assert jnp.allclose(out2, ref2, rtol=1e-4, atol=1e-5), (out2, ref2)

    # Case 3: large default-tile path (multi-step with tile_rows=1024), f32.
    k9, k10 = jax.random.split(jax.random.PRNGKey(2), 2)
    n_at = 50000                                  # 3N = 150000 -> 2 grid steps
    ptr3 = jnp.asarray([0, 20000, 50000], dtype=jnp.int32)
    y_c = jax.random.normal(k9, (2,), dtype=jnp.float32)
    fgt_c = jax.random.normal(k10, (n_at, 3), dtype=jnp.float32)
    pe_c = y_c * 0.5
    fpd_c = fgt_c * 0.9

    out3 = weighted_energy_forces_loss(ptr3, y_c, fgt_c, pe_c, fpd_c, 2.0, 1.5)
    out3 = jax.block_until_ready(out3)
    ref3 = _reference(ptr3, y_c, fgt_c, pe_c, fpd_c, 2.0, 1.5)
    assert jnp.allclose(out3, ref3, rtol=1e-4, atol=1e-5), (out3, ref3)

    print("KERNEL_OK")
</pallas_src>

<mosaic_0001>
module attributes {stable_mosaic.version = 11 : i64} {
  func.func @_loss_kernel(%arg0: i32, %arg1: memref<2xf32, #tpu.memory_space<smem>>, %arg2: memref<1x128xf32, #tpu.memory_space<vmem>>, %arg3: memref<1x128xf32, #tpu.memory_space<vmem>>, %arg4: memref<1x128xf32, #tpu.memory_space<vmem>>, %arg5: memref<8x128xf32, #tpu.memory_space<vmem>>, %arg6: memref<8x128xf32, #tpu.memory_space<vmem>>, %arg7: memref<1xf32, #tpu.memory_space<smem>>, %arg8: memref<1xf32, #tpu.memory_space<smem>>) attributes {dimension_semantics = [#tpu.dimension_semantics<arbitrary>], iteration_bounds = array<i64: 1>, scalar_prefetch = 0 : i64, scratch_operands = 1 : i64, tpu.core_type = #tpu.core_type<tc>, window_params = [{transform_indices = @transform_0, window_bounds = array<i64: 2>}, {pipeline_mode = #tpu.pipeline_mode<synchronous>, transform_indices = @transform_1, window_bounds = array<i64: 1, 128>}, {pipeline_mode = #tpu.pipeline_mode<synchronous>, transform_indices = @transform_2, window_bounds = array<i64: 1, 128>}, {pipeline_mode = #tpu.pipeline_mode<synchronous>, transform_indices = @transform_3, window_bounds = array<i64: 1, 128>}, {transform_indices = @transform_4, window_bounds = array<i64: 8, 128>}, {transform_indices = @transform_5, window_bounds = array<i64: 8, 128>}, {transform_indices = @transform_6, window_bounds = array<i64: 1>}]} {
    %c0_i32 = arith.constant 0 : i32
    %0 = arith.cmpi eq, %arg0, %c0_i32 : i32
    %1 = arith.extui %0 : i1 to i32
    %c0_i32_0 = arith.constant 0 : i32
    %2 = arith.cmpi ne, %1, %c0_i32_0 : i32
    scf.if %2 {
      %cst_8 = arith.constant 0.000000e+00 : f32
      %c0_9 = arith.constant 0 : index
      %17 = memref.load %arg8[%c0_9] : memref<1xf32, #tpu.memory_space<smem>>
      memref.store %cst_8, %arg8[%c0_9] : memref<1xf32, #tpu.memory_space<smem>>
    } else {
    }
    %c0 = arith.constant 0 : index
    %c0_1 = arith.constant 0 : index
    %3 = vector.load %arg5[%c0, %c0_1] : memref<8x128xf32, #tpu.memory_space<vmem>>, vector<8x128xf32>
    %c0_2 = arith.constant 0 : index
    %c0_3 = arith.constant 0 : index
    %4 = vector.load %arg6[%c0_2, %c0_3] : memref<8x128xf32, #tpu.memory_space<vmem>>, vector<8x128xf32>
    %5 = arith.subf %3, %4 : vector<8x128xf32>
    %c0_4 = arith.constant 0 : index
    %6 = memref.load %arg8[%c0_4] : memref<1xf32, #tpu.memory_space<smem>>
    %7 = arith.mulf %5, %5 : vector<8x128xf32>
    %8 = vector.shape_cast %7 : vector<8x128xf32> to vector<1x8x128xf32>
    %cst = arith.constant dense<0.000000e+00> : vector<1xf32>
    %9 = vector.multi_reduction <add>, %8, %cst [1, 2] : vector<1x8x128xf32> to vector<1xf32>
    %10 = vector.shape_cast %9 : vector<1xf32> to vector<1x1x1xf32>
    %11 = vector.extract %10[0, 0, 0] : f32 from vector<1x1x1xf32>
    %12 = arith.addf %6, %11 : f32
    %c0_5 = arith.constant 0 : index
    %13 = memref.load %arg8[%c0_5] : memref<1xf32, #tpu.memory_space<smem>>
    memref.store %12, %arg8[%c0_5] : memref<1xf32, #tpu.memory_space<smem>>
    %c0_i32_6 = arith.constant 0 : i32
    %14 = arith.cmpi eq, %arg0, %c0_i32_6 : i32
    %15 = arith.extui %14 : i1 to i32
    %c0_i32_7 = arith.constant 0 : i32
    %16 = arith.cmpi ne, %15, %c0_i32_7 : i32
    scf.if %16 {
      %c0_8 = arith.constant 0 : index
      %c0_9 = arith.constant 0 : index
      %17 = vector.load %arg2[%c0_8, %c0_9] : memref<1x128xf32, #tpu.memory_space<vmem>>, vector<1x128xf32>
      %c0_10 = arith.constant 0 : index
      %c0_11 = arith.constant 0 : index
      %18 = vector.load %arg3[%c0_10, %c0_11] : memref<1x128xf32, #tpu.memory_space<vmem>>, vector<1x128xf32>
      %19 = arith.subf %17, %18 : vector<1x128xf32>
      %c0_12 = arith.constant 0 : index
      %c0_13 = arith.constant 0 : index
      %20 = vector.load %arg4[%c0_12, %c0_13] : memref<1x128xf32, #tpu.memory_space<vmem>>, vector<1x128xf32>
      %21 = arith.mulf %19, %20 : vector<1x128xf32>
      %22 = arith.mulf %21, %21 : vector<1x128xf32>
      %23 = vector.shape_cast %22 : vector<1x128xf32> to vector<1x1x128xf32>
      %cst_14 = arith.constant dense<0.000000e+00> : vector<1xf32>
      %24 = vector.multi_reduction <add>, %23, %cst_14 [1, 2] : vector<1x1x128xf32> to vector<1xf32>
      %25 = vector.shape_cast %24 : vector<1xf32> to vector<1x1x1xf32>
      %26 = vector.extract %25[0, 0, 0] : f32 from vector<1x1x1xf32>
      %c0_15 = arith.constant 0 : index
      %27 = memref.load %arg1[%c0_15] : memref<2xf32, #tpu.memory_space<smem>>
      %28 = arith.mulf %27, %26 : f32
      %c1 = arith.constant 1 : index
      %29 = memref.load %arg1[%c1] : memref<2xf32, #tpu.memory_space<smem>>
      %c0_16 = arith.constant 0 : index
      %30 = memref.load %arg8[%c0_16] : memref<1xf32, #tpu.memory_space<smem>>
      %31 = arith.mulf %29, %30 : f32
      %32 = arith.addf %28, %31 : f32
      %c0_17 = arith.constant 0 : index
      %33 = memref.load %arg7[%c0_17] : memref<1xf32, #tpu.memory_space<smem>>
      memref.store %32, %arg7[%c0_17] : memref<1xf32, #tpu.memory_space<smem>>
    } else {
    }
    return
  }
  func.func @transform_0(%arg0: i32) -> i32 {
    %c0_i32 = arith.constant 0 : i32
    %c0_i32_0 = arith.constant 0 : i32
    return %c0_i32 : i32
  }
  func.func @transform_1(%arg0: i32) -> (i32, i32) {
    %c0_i32 = arith.constant 0 : i32
    %c0_i32_0 = arith.constant 0 : i32
    %c0_i32_1 = arith.constant 0 : i32
    return %c0_i32, %c0_i32_0 : i32, i32
  }
  func.func @transform_2(%arg0: i32) -> (i32, i32) {
    %c0_i32 = arith.constant 0 : i32
    %c0_i32_0 = arith.constant 0 : i32
    %c0_i32_1 = arith.constant 0 : i32
    return %c0_i32, %c0_i32_0 : i32, i32
  }
  func.func @transform_3(%arg0: i32) -> (i32, i32) {
    %c0_i32 = arith.constant 0 : i32
    %c0_i32_0 = arith.constant 0 : i32
    %c0_i32_1 = arith.constant 0 : i32
    return %c0_i32, %c0_i32_0 : i32, i32
  }
  func.func @transform_4(%arg0: i32) -> (i32, i32) {
    %c0_i32 = arith.constant 0 : i32
    %c0_i32_0 = arith.constant 0 : i32
    return %arg0, %c0_i32 : i32, i32
  }
  func.func @transform_5(%arg0: i32) -> (i32, i32) {
    %c0_i32 = arith.constant 0 : i32
    %c0_i32_0 = arith.constant 0 : i32
    return %arg0, %c0_i32 : i32, i32
  }
  func.func @transform_6(%arg0: i32) -> i32 {
    %c0_i32 = arith.constant 0 : i32
    %c0_i32_0 = arith.constant 0 : i32
    return %c0_i32 : i32
  }
}

</mosaic_0001>

<bundles_post_ra>
// kernel: tpu_custom_call.1
= control target key start
LH: loop header
LB: loop body
LE: loop exit
PB: predicated region body
PF: predicated region fallthrough
CT: control target
= control target key end

     0   :  { %11 = vsyncpa [#allocation5], 0  ;;  %s255_s0 = inlined_call_operand.hbm [shape: f32[2], index: 0, kind: input, shape index: {}]   ;;  %s256_s1 = inlined_call_operand.vmem [shape: f32[1,128], index: 1, kind: input, shape index: {}]   ;;  %s257_s2 = inlined_call_operand.vmem [shape: f32[1,128], index: 2, kind: input, shape index: {}]   ;;  %s258_s3 = inlined_call_operand.hbm [shape: f32[1,128], index: 3, kind: input, shape index: {}]   ;;  %s259_s4 = inlined_call_operand.vmem [shape: f32[8,128], index: 4, kind: input, shape index: {}]   ;;  %s260_s5 = inlined_call_operand.vmem [shape: f32[8,128], index: 5, kind: input, shape index: {}]   ;;  %s261_s6 = inlined_call_operand.hbm [shape: f32[1], index: 6, kind: output, shape index: {}]  }
   0x1   :  { %12 = vsyncpa [#allocation4], 0 }
   0x2   :  { %13 = vsyncpa [#allocation6], 0  ;;  %s121_s23 = scalar_lea.hbm %s255_s0, 16 }
   0x3   :  { %p122_p0 = scmp.ne.s32.totalorder %s255_s0, %s121_s23  ;;  %p125_p1 = scmp.lt.u32.totalorder %s121_s23, %s255_s0 }
   0x5   :  { %p127_p2 = pnand %p125_p1, %p122_p0 }
   0x7   :  { %130 = shalt.err (!%p127_p2)
}
   0x8   :  { %s169_s28 = smov [#allocation3]   ;;  %s170_s7 = smov [#allocation7]  }
   0x9   :  { %21 = dma.hbm_to_smem %s255_s0, 16, %s169_s28, [#allocation5]  }
   0xa   :  { %s32_s8 = sshll.u32 %s170_s7, 4  ;;  %s131_s11 = scalar_lea.hbm %s258_s3, 16  ;;  %s33_s8 = int_to_ptr.vmem [resolvable:$true] %s32_s8 }
   0xb   :  { %p132_p3 = scmp.ne.s32.totalorder %s258_s3, %s131_s11  ;;  %p135_p4 = scmp.lt.u32.totalorder %s131_s11, %s258_s3 }
   0xd   :  { %p137_p5 = pnand %p135_p4, %p132_p3 }
   0xf   :  { %140 = shalt.err (!%p137_p5)
}
  0x10   :  { %s141_s16 = scalar_lea.vmem %s33_s8, 16  ;;  %s145_s0 = scalar_lea.vmem %s33_s8, 32 }
  0x11   :  { %p142_p6 = scmp.ne.s32.totalorder %s33_s8, %s141_s16  ;;  %p146_p7 = scmp.lt.s32.totalorder %s33_s8, %s33_s8 }
  0x12   :  { %p147_p8 = scmp.lt.s32.totalorder %s145_s0, %s141_s16 }
  0x14   :  { %p148_p9 = por %p147_p8, %p146_p7 }
  0x16   :  { %p149_p10 = pnand %p148_p9, %p142_p6 }
  0x18   :  { %152 = shalt.err (!%p149_p10)
}
  0x19   :  { %35 = dma.hbm_to_vmem [thread:$0]  %s258_s3, 16, %s33_s8, [#allocation4]  }
  0x1a   :  { %163 = dma.done.wait [#allocation5], 16  }
  0x1b   :  { %164 = vsyncadd [#allocation5], 4294967280 }
  0x1c   :  { %165 = dma.done.wait [#allocation4], 16  }
  0x1d   :  { %166 = vsyncadd [#allocation4], 4294967280 }
  0x1e   :  { %46 = sfence }
  0x1f   :  { %v53_v0 = vld [vmem:[%s259_s4] sm:$0xff]  ;;  %v76_v5 = vld [vmem:[#allocation7] sm:$0x1]  ;;  %vm79_vm0 = vcmask 1040384   ;;  %s153_s7 = scalar_lea.hbm %s261_s6, 16 }
  0x20   :  { %v54_v1 = vld [vmem:[%s260_s5] sm:$0xff]  ;;  %p154_p11 = scmp.ne.s32.totalorder %s261_s6, %s153_s7  ;;  %p157_p12 = scmp.lt.u32.totalorder %s153_s7, %s261_s6 }
  0x21   :  { %v73_v2 = vld [vmem:[%s256_s1] sm:$0x1]  ;;  %v55_v3 = vsub.f32 %v53_v0, %v54_v1  ;;  %s113_s1 = sld [smem:[#allocation3 + $0x1]] }
  0x22   :  { %v74_v4 = vld [vmem:[%s257_s2] sm:$0x1]  ;;  %s90_s2 = sld [smem:[#allocation3]]  ;;  %p159_p13 = pnand %p157_p12, %p154_p11 }
  0x23   :  { %v75_v6 = vsub.f32 %v73_v2, %v74_v4  ;;  %v57_v7 = vmul.f32 %v55_v3, %v55_v3 }
  0x25   :  { %v77_v8 = vmul.f32 %v76_v5, %v75_v6  ;;  %58 = vadd.xlane.f32.xlu0 %v57_v7 }
  0x27   :  { %v78_v9 = vmul.f32 %v77_v8, %v77_v8 }
  0x29   :  { %v80_v10 = vsel %vm79_vm0, %v78_v9, 0.0 }
  0x2a   :  { %81 = vadd.xlane.f32.xlu0 %v80_v10 }
  0xb2   :  { %v59_v11 = vpop.xlane.xlu0 %58 }
  0xb3   :  { %v60_v12 = vrot.slane %v59_v11, 4 }
  0xb5   :  { %v61_v13 = vadd.f32 %v60_v12, %v59_v11 }
  0xb7   :  { %v82_v14 = vpop.xlane.xlu0 %81  ;;  %v62_v15 = vrot.slane %v61_v13, 2 }
  0xb8   :  { %v83_v16 = vrot.slane %v82_v14, 4 }
  0xb9   :  { %v63_v18 = vadd.f32 %v62_v15, %v61_v13 }
  0xba   :  { %v84_v17 = vadd.f32 %v83_v16, %v82_v14 }
  0xbb   :  { %v64_v20 = vrot.slane %v63_v18, 1 }
  0xbc   :  { %v85_v19 = vrot.slane %v84_v17, 2 }
  0xbd   :  { %v65_v22 = vadd.f32 %v64_v20, %v63_v18 }
  0xbe   :  { %v86_v21 = vadd.f32 %v85_v19, %v84_v17 }
  0xbf   :  { %114 = vpush %v65_v22 }
  0xc0   :  { %v87_v23 = vrot.slane %v86_v21, 1 }
  0xc2   :  { %v88_v24 = vadd.f32 %v87_v23, %v86_v21 }
  0xc4   :  { %116 = vpush %v88_v24 }
  0xf0   :  { %s115_s4 = spop %114 }
  0xf1   :  { %s94_s5 = smul.f32 %s115_s4, %s113_s1 }
  0xf5   :  { %s117_s26 = spop %116 }
  0xf6   :  { %s91_s27 = smul.f32 %s117_s26, %s90_s2 }
  0xf8   :  { %s95_s28 = sadd.f32 %s94_s5, %s91_s27 }
  0xfa   :  { %97 = sst [smem:[#allocation8]] %s95_s28 }
  0xfb   :  { %162 = shalt.err (!%p159_p13)
}
  0xfc   :  { %s171_s12 = smov [#allocation8]  }
  0xfd   :  { %105 = dma.smem_to_hbm %s171_s12, 16, %s261_s6, [#allocation6]  }
  0xfe   :  { %167 = dma.done.wait [#allocation6], 16  }
  0xff   :  { %168 = vsyncadd [#allocation6], 4294967280 }
 0x100   :  { %109 = sfence }
 0x101   :  { %110 = vsyncpa [#allocation4], 1 }
 0x102   :  { %111 = vsyncpa [#allocation5], 1 }
 0x103   :  { %112 = vsyncpa [#allocation6], 1 }

</bundles_post_ra>
